<compile_context>
chip_gen: v6e
topology: v6e:2x2x1
jax: 0.10.0
libtpu: 0.0.40
codegen_flags: <defaults>
</compile_context>

<pallas_src>
import functools

import jax
import jax.numpy as jnp
from jax.experimental import pallas as pl
from jax.experimental.pallas import tpu as pltpu


# --------------------------------------------------------------------------
# Pallas kernel
# --------------------------------------------------------------------------
def _channel_layernorm_kernel(*refs, eps, has_bias):
    if has_bias:
        x_ref, g_ref, b_ref, o_ref = refs
    else:
        x_ref, g_ref, o_ref = refs
        b_ref = None

    x = x_ref[...].astype(jnp.float32)                  # (TB, C, TL)

    # Two-pass statistics over the channel (sublane) axis: numerically matches the
    # reference (x - mean)^2 formulation.  Reductions are cross-sublane (XLU);
    # everything else is VPU/EUP — all hidden under the HBM DMAs.
    mean = jnp.mean(x, axis=1, keepdims=True)           # (TB, 1, TL)
    xc = x - mean
    var = jnp.mean(xc * xc, axis=1, keepdims=True)      # unbiased=False
    inv = jax.lax.rsqrt(var + eps)                      # EUP

    y = xc * inv * g_ref[...].astype(jnp.float32)       # g: (1, C, 1) broadcasts
    if b_ref is not None:
        y = y + b_ref[...].astype(jnp.float32)
    o_ref[...] = y.astype(o_ref.dtype)


# --------------------------------------------------------------------------
# Tiling policy
# --------------------------------------------------------------------------
def _vmem_budgets():
    """Return (per_tile_byte_budget, vmem_limit_bytes), generation-aware."""
    phys = None
    try:
        info = pltpu.get_tpu_info()
        phys = getattr(info, "vmem_capacity_bytes", None)
    except Exception:
        phys = None
    if phys is None:
        phys = 64 * 1024 * 1024                 # conservative: assume v7x-sized VMEM
    if phys >= 100 * 1024 * 1024:               # v5e / v6e: 128 MiB physical
        return 6 * 1024 * 1024, 96 * 1024 * 1024
    # v7x: 64 MiB physical — smaller tiles, lower scoped limit.
    return 3 * 1024 * 1024, 48 * 1024 * 1024


def _choose_tiles(B, C, HW, itemsize, budget_bytes, lane_tile=None, batch_tile=None):
    """Pick (TB, TL): batch-rows and lanes per block, from a VMEM byte budget."""
    # Sublane-padded bytes per lane column of one (C,) slab (conservative across dtypes).
    row_bytes = ((C * itemsize + 31) // 32) * 32
    max_tl = max(128, budget_bytes // row_bytes)

    # ---- lane tile --------------------------------------------------------
    if lane_tile is not None:
        assert lane_tile == HW or lane_tile % 128 == 0, "lane_tile must be a 128-multiple or HW"
        TL = min(lane_tile, HW)
    elif HW <= max_tl:
        TL = HW                                  # whole row fits the budget (any alignment)
    else:
        TL = max(128, (max_tl // 128) * 128)     # budget-capped, 128-aligned
        if HW % 128 == 0:
            # Prefer a 128-multiple that divides HW evenly -> no ragged/masked tail tile.
            t = TL
            while t >= 128 and HW % t != 0:
                t -= 128
            if t >= 128:
                TL = t

    # ---- batch tile (pack batch rows when HW tiles are small) -------------
    if batch_tile is not None:
        TB = max(1, min(batch_tile, B))
    else:
        TB = max(1, min(B, budget_bytes // (row_bytes * TL)))
        while TB > 1 and B % TB != 0:            # prefer an even divisor of B
            TB -= 1

    # ---- guarantee >= 2 grid steps (pipelining; both TCs on v7x) ----------
    if lane_tile is None and batch_tile is None:
        n_steps = pl.cdiv(B, TB) * pl.cdiv(HW, TL)
        if n_steps < 2:
            if B >= 2:
                TB = max(1, B // 2)
            elif HW >= 256:
                TL = max(128, pl.cdiv(HW // 2, 128) * 128)

    return TB, TL


# --------------------------------------------------------------------------
# Wrapper
# --------------------------------------------------------------------------
def channel_layernorm(x, g, b=None, *, lane_tile=None, batch_tile=None):
    """x: (B, C, H, W); g/b: (1, C, 1, 1).  Normalizes over the channel axis."""
    B, C, H, W = x.shape
    HW = H * W
    # Matches the PyTorch module exactly: eps depends on the input dtype.
    eps = 1e-5 if x.dtype == jnp.float32 else 1e-3
    has_bias = b is not None
    itemsize = jnp.dtype(x.dtype).itemsize

    x3 = x.reshape(B, C, HW)                     # free reshape, no transpose
    g3 = g.reshape(1, C, 1)
    args = [x3, g3]

    budget_bytes, vmem_limit = _vmem_budgets()
    TB, TL = _choose_tiles(B, C, HW, itemsize, budget_bytes, lane_tile, batch_tile)
    grid = (pl.cdiv(B, TB), pl.cdiv(HW, TL))

    in_specs = [
        pl.BlockSpec((TB, C, TL), lambda bi, li: (bi, 0, li)),
        # Constant-index block: stays resident across grid steps (no re-DMA).
        pl.BlockSpec((1, C, 1), lambda bi, li: (0, 0, 0)),
    ]
    if has_bias:
        in_specs.append(pl.BlockSpec((1, C, 1), lambda bi, li: (0, 0, 0)))
        args.append(b.reshape(1, C, 1))

    n_elems = B * C * HW
    cost = pl.CostEstimate(
        flops=8 * n_elems,
        transcendentals=B * HW,                  # one rsqrt per (batch, spatial) position
        bytes_accessed=2 * n_elems * itemsize
        + (2 if has_bias else 1) * C * jnp.dtype(g.dtype).itemsize,
    )

    out = pl.pallas_call(
        functools.partial(_channel_layernorm_kernel, eps=eps, has_bias=has_bias),
        out_shape=jax.ShapeDtypeStruct((B, C, HW), x.dtype),
        grid=grid,
        in_specs=in_specs,
        out_specs=pl.BlockSpec((TB, C, TL), lambda bi, li: (bi, 0, li)),
        compiler_params=pltpu.CompilerParams(
            # Both axes fully independent -> megacore / 2-TC sharding on v7x.
            dimension_semantics=("parallel", "parallel"),
            vmem_limit_bytes=vmem_limit,
        ),
        cost_estimate=cost,
    )(*args)
    return out.reshape(B, C, H, W)


# --------------------------------------------------------------------------
# Pure-JAX reference (mirrors the PyTorch forward) for correctness checking
# --------------------------------------------------------------------------
def channel_layernorm_ref(x, g, b=None):
    eps = 1e-5 if x.dtype == jnp.float32 else 1e-3
    x32 = x.astype(jnp.float32)
    mean = jnp.mean(x32, axis=1, keepdims=True)
    var = jnp.mean((x32 - mean) ** 2, axis=1, keepdims=True)
    y = (x32 - mean) * jax.lax.rsqrt(var + eps) * g.astype(jnp.float32)
    if b is not None:
        y = y + b.astype(jnp.float32)
    return y.astype(x.dtype)


if __name__ == "__main__":
    key = jax.random.PRNGKey(0)
    k1, k2, k3, k4, k5 = jax.random.split(key, 5)

    # --- case 1: module defaults (bias=False), small f32 NCHW ---------------
    B, C, H, W = 2, 4, 16, 16
    x = jax.random.normal(k1, (B, C, H, W), jnp.float32)
    g = jnp.ones((1, C, 1, 1), jnp.float32) + 0.1 * jax.random.normal(k2, (1, C, 1, 1), jnp.float32)
    y = jax.block_until_ready(channel_layernorm(x, g))
    y_ref = channel_layernorm_ref(x, g)
    assert y.shape == (B, C, H, W)
    assert bool(jnp.all(jnp.isfinite(y)))
    assert bool(jnp.allclose(y, y_ref, rtol=1e-4, atol=1e-4))

    # --- case 2: bias=True, bf16 eps path, forced multi-tile grid -----------
    B2, C2, H2, W2 = 2, 8, 32, 32                # HW = 1024
    x2 = jax.random.normal(k3, (B2, C2, H2, W2), jnp.float32).astype(jnp.bfloat16)
    g2 = jnp.ones((1, C2, 1, 1), jnp.bfloat16)
    b2 = (0.05 * jax.random.normal(k4, (1, C2, 1, 1), jnp.float32)).astype(jnp.bfloat16)
    y2 = jax.block_until_ready(channel_layernorm(x2, g2, b2, lane_tile=256, batch_tile=1))
    y2_ref = channel_layernorm_ref(x2, g2, b2)
    assert bool(jnp.all(jnp.isfinite(y2.astype(jnp.float32))))
    assert bool(jnp.allclose(y2.astype(jnp.float32), y2_ref.astype(jnp.float32),
                             rtol=3e-2, atol=3e-2))

    # --- case 3: spatial extent NOT a 128-multiple (14x14=196), batch-blocked
    B3, C3, H3, W3 = 3, 16, 14, 14
    x3 = jax.random.normal(k5, (B3, C3, H3, W3), jnp.float32)
    g3 = jnp.ones((1, C3, 1, 1), jnp.float32)
    y3 = jax.block_until_ready(channel_layernorm(x3, g3))
    y3_ref = channel_layernorm_ref(x3, g3)
    assert bool(jnp.all(jnp.isfinite(y3)))
    assert bool(jnp.allclose(y3, y3_ref, rtol=1e-4, atol=1e-4))

    print("KERNEL_OK")
</pallas_src>

<mosaic_0001>
module attributes {stable_mosaic.version = 11 : i64} {
  func.func @_channel_layernorm_kernel(%arg0: i32, %arg1: i32, %arg2: memref<1x4x256xf32, #tpu.memory_space<vmem>>, %arg3: memref<1x4x1xf32, #tpu.memory_space<vmem>>, %arg4: memref<1x4x256xf32, #tpu.memory_space<vmem>>) attributes {dimension_semantics = [#tpu.dimension_semantics<parallel>, #tpu.dimension_semantics<parallel>], iteration_bounds = array<i64: 2, 1>, scalar_prefetch = 0 : i64, scratch_operands = 0 : i64, tpu.core_type = #tpu.core_type<tc>, window_params = [{transform_indices = @transform_0, window_bounds = array<i64: 1, 4, 256>}, {pipeline_mode = #tpu.pipeline_mode<synchronous>, transform_indices = @transform_1, window_bounds = array<i64: 1, 4, 1>}, {transform_indices = @transform_2, window_bounds = array<i64: 1, 4, 256>}]} {
    %c0 = arith.constant 0 : index
    %c0_0 = arith.constant 0 : index
    %c0_1 = arith.constant 0 : index
    %0 = vector.load %arg2[%c0, %c0_0, %c0_1] : memref<1x4x256xf32, #tpu.memory_space<vmem>>, vector<1x4x256xf32>
    %cst = arith.constant dense<0.000000e+00> : vector<1x256xf32>
    %1 = vector.multi_reduction <add>, %0, %cst [1] : vector<1x4x256xf32> to vector<1x256xf32>
    %2 = vector.shape_cast %1 : vector<1x256xf32> to vector<1x1x256xf32>
    %cst_2 = arith.constant 4.000000e+00 : f32
    %3 = vector.broadcast %cst_2 : f32 to vector<1x1x256xf32>
    %4 = arith.divf %2, %3 : vector<1x1x256xf32>
    %5 = vector.broadcast %4 : vector<1x1x256xf32> to vector<1x4x256xf32>
    %6 = arith.subf %0, %5 : vector<1x4x256xf32>
    %7 = arith.mulf %6, %6 : vector<1x4x256xf32>
    %cst_3 = arith.constant dense<0.000000e+00> : vector<1x256xf32>
    %8 = vector.multi_reduction <add>, %7, %cst_3 [1] : vector<1x4x256xf32> to vector<1x256xf32>
    %9 = vector.shape_cast %8 : vector<1x256xf32> to vector<1x1x256xf32>
    %cst_4 = arith.constant 4.000000e+00 : f32
    %10 = vector.broadcast %cst_4 : f32 to vector<1x1x256xf32>
    %11 = arith.divf %9, %10 : vector<1x1x256xf32>
    %cst_5 = arith.constant 9.99999974E-6 : f32
    %12 = vector.broadcast %cst_5 : f32 to vector<1x1x256xf32>
    %13 = arith.addf %11, %12 : vector<1x1x256xf32>
    %14 = math.rsqrt %13 : vector<1x1x256xf32>
    %15 = vector.broadcast %14 : vector<1x1x256xf32> to vector<1x4x256xf32>
    %16 = arith.mulf %6, %15 : vector<1x4x256xf32>
    %c0_6 = arith.constant 0 : index
    %c0_7 = arith.constant 0 : index
    %c0_8 = arith.constant 0 : index
    %17 = vector.load %arg3[%c0_6, %c0_7, %c0_8] : memref<1x4x1xf32, #tpu.memory_space<vmem>>, vector<1x4x1xf32>
    %18 = vector.broadcast %17 : vector<1x4x1xf32> to vector<1x4x256xf32>
    %19 = arith.mulf %16, %18 : vector<1x4x256xf32>
    %c0_9 = arith.constant 0 : index
    %c0_10 = arith.constant 0 : index
    %c0_11 = arith.constant 0 : index
    %20 = vector.load %arg4[%c0_9, %c0_10, %c0_11] : memref<1x4x256xf32, #tpu.memory_space<vmem>>, vector<1x4x256xf32>
    tpu.vector_store %arg4[%c0_9, %c0_10, %c0_11], %19 {strides = array<i32>} : memref<1x4x256xf32, #tpu.memory_space<vmem>>, vector<1x4x256xf32>,
    return
  }
  func.func @transform_0(%arg0: i32, %arg1: i32) -> (i32, i32, i32) {
    %c0_i32 = arith.constant 0 : i32
    %c0_i32_0 = arith.constant 0 : i32
    return %arg0, %c0_i32, %arg1 : i32, i32, i32
  }
  func.func @transform_1(%arg0: i32, %arg1: i32) -> (i32, i32, i32) {
    %c0_i32 = arith.constant 0 : i32
    %c0_i32_0 = arith.constant 0 : i32
    %c0_i32_1 = arith.constant 0 : i32
    %c0_i32_2 = arith.constant 0 : i32
    return %c0_i32, %c0_i32_0, %c0_i32_1 : i32, i32, i32
  }
  func.func @transform_2(%arg0: i32, %arg1: i32) -> (i32, i32, i32) {
    %c0_i32 = arith.constant 0 : i32
    %c0_i32_0 = arith.constant 0 : i32
    return %arg0, %c0_i32, %arg1 : i32, i32, i32
  }
}

</mosaic_0001>

<bundles_post_ra>
// kernel: tpu_custom_call.1
= control target key start
LH: loop header
LB: loop body
LE: loop exit
PB: predicated region body
PF: predicated region fallthrough
CT: control target
= control target key end

     0   :  { %7 = vsyncpa [#allocation3], 0  ;;  %s713_s0 = inlined_call_operand.hbm [shape: f32[2,4,256], index: 0, kind: input, shape index: {}]   ;;  %s714_s1 = inlined_call_operand.vmem [shape: f32[1,4,1], index: 1, kind: input, shape index: {}]   ;;  %s715_s2 = inlined_call_operand.hbm [shape: f32[2,4,256], index: 2, kind: output, shape index: {}]  }
   0x1   :  { %9 = vsyncpa [#allocation3 + $0x1], 0 }
   0x2   :  { %10 = vsyncpa [#allocation4], 0 }
   0x3   :  { %12 = vsyncpa [#allocation4 + $0x1], 0  ;;  %s568_s9 = smov 0   ;;  %s570_s10 = smov 0  }
   0x4   :  { %s572_s11 = smov 0   ;;  %s574_s12 = smov 0  }
   0x5   :  { %s576_s13 = smov 0   ;;  %s578_s14 = smov 0  }
   0x6 LB: > { %s352_s15 = sadd.s32 4294967295, %s547_s14   ;;  %s353_s16 = sadd.s32 4294967294, %s547_s14   ;;  %s547_s14 = sphi %s578_s14, %s18_s14   ;;  %s543_s13 = sphi %s576_s13, %s727_s13   ;;  %s539_s12 = sphi %s574_s12, %s726_s12   ;;  %s535_s11 = sphi %s572_s11, %s725_s11   ;;  %s531_s10 = sphi %s570_s10, %s724_s10   ;;  %s527_s9 = sphi %s568_s9, %s723_s9  }
   0x7   : > { %s30_s17 = sadd.s32 1, %s543_s13  ;;  %s39_s18 = sadd.s32 1, %s535_s11 }
   0x8   : > { %p32_p0 = scmp.ge.s32.totalorder %s30_s17, 2  ;;  %p46_p1 = scmp.ne.s32.totalorder %s535_s11, %s531_s10 }
   0x9   : > { %p47_p2 = scmp.eq.s32.totalorder %s547_s14, 0  ;;  %p52_p3 = scmp.ne.s32.totalorder %s531_s10, %s527_s9 }
   0xa   : > { %s729_s17 = smov (%p32_p0, %s30_s17), 0  ;;  %p53_p5 = scmp.eq.s32.totalorder %s352_s15, 0 }
   0xb   : > { %p609_p4 = por %p47_p2, %p46_p1  ;;  %s34_s20 = ssub.s32 %s543_s13, %s729_s17 }
   0xc   : > { %p99_p6 = scmp.eq.s32.totalorder %s352_s15, 1  ;;  %p37_p7 = scmp.eq.s32.totalorder %s34_s20, 0 }
   0xd   : > { %p615_p8 = por %p53_p5, %p52_p3  ;;  %p105_p10 = scmp.eq.s32.totalorder %s353_s16, 1 }
   0xe   : > { %p619_p9 = por %p99_p6, %p46_p1  ;;  %p381_p13 = scmp.lt.s32.totalorder %s547_s14, 2 }
   0xf   : > { %s624_s23 = scalar_select %p37_p7, %s535_s11, %s39_s18  }
  0x10   : > { %p626_p11 = por %p105_p10, %p52_p3  ;;  %s128_s25 = sand.u32 1, %s535_s11  }
  0x11   : > { %s356_s26 = sshll.u32 %s128_s25, 3  ;;  %s367_s27 = sshll.u32 %s543_s13, 7 }
  0x12   : > { %s719_s24 = scalar_select %p626_p11, 1, 0 }
  0x13   : > { %s140_s30 = scalar_lea.hbm %s713_s0, %s367_s27  ;;  %s132_s3 = scalar_lea.vmem [#allocation2], %s356_s26 }
  0x14   : > { %s142_s4 = sshll.u32 %s132_s3, 4  ;;  %p639_p0 = pnand %p381_p13, %p609_p4  ;;  %s143_s4 = int_to_ptr.vmem [resolvable:$true] %s142_s4 }
  0x15   : > { %p359_p1 = scmp.ge.s32.totalorder %s547_s14, 1  ;;  %p147_p2 = scmp.lt.s32.totalorder %s547_s14, 3 }
  0x16   : > { %s129_s6 = scalar_lea.sflag [#allocation3], %s128_s25  ;;  %p441_p3 = pneg %p639_p0 }
  0x17   : > { %s452_s7 = scalar_lea.vmem %s143_s4, 128  ;;  %s549_s8 = smov [#allocation2]  }
  0x18   : > { %p453_p5 = scmp.ne.s32.totalorder %s143_s4, %s452_s7  ;;  %s457_s15 = sshll.u32 %s549_s8, 4  ;;  %s458_s15 = int_to_ptr.vmem [resolvable:$false] %s457_s15 }
  0x19   : > { %s459_s16 = scalar_lea.vmem %s458_s15, 256  ;;  %p460_p10 = scmp.lt.s32.totalorder %s143_s4, %s458_s15 }
  0x1a   : > { %p455_p6 = pnand %p453_p5, %p441_p3  ;;  %p461_p12 = scmp.lt.s32.totalorder %s459_s16, %s452_s7 }
  0x1c   : > { %p456_p7 = pneg %p455_p6  ;;  %p462_p4 = por %p461_p12, %p460_p10 }
  0x1e   : > { %p463_p13 = pnand %p462_p4, %p456_p7 }
  0x20   : > { %466 = shalt.err (!%p463_p13)
}
  0x21   : > { %376 = dma.hbm_to_vmem [thread:$0]  (!%p639_p0), %s140_s30, 128, %s143_s4, %s129_s6  }
  0x22   : > { %p148_p11 = pnand %p359_p1, %p147_p2 }
  0x23   : > { %s654_s18 = sand.u32 (!%p148_p11), 1, %s531_s10  }
  0x24   : > { %151 = sbr.rel (%p148_p11) target bundleno = 185 (0xb9), region = 28  ;;  %s360_s19 = sshll.u32 (!%p148_p11), %s654_s18, 3 }
  0x25   : > { %s154_s20 = scalar_lea.sflag (!%p148_p11), [#allocation3], %s654_s18  ;;  %s157_s25 = scalar_lea.vmem (!%p148_p11), [#allocation2], %s360_s19 }
  0x29   : > { %518 = dma.done.wait (%p615_p8), %s154_s20, 128  }
  0x2a   : > { %520 = vsyncadd (%p615_p8), %s154_s20, 4294967168  ;;  %v550_v0 = vmov 0   ;;  %v236_v1 = vld [vmem:[%s714_s1] sm:$0xf]  ;;  %vm184_vm0 = vcmask 1043456   ;;  %v244_v44 = vlaneseq  ;;  %s368_s21 = sshll.u32 %s539_s12, 7 }
  0x2b   : > { %433 = vset.pattern.permute.xlu0 %v550_v0  ;;  %v180_v2 = vld [vmem:[%s157_s25] sm:$0xff]  ;;  %v551_v42 = vmov 839922192   ;;  %s177_s28 = scalar_lea.vmem [#allocation5], %s360_s19  ;;  %s266_s4 = scalar_lea.hbm %s715_s2, %s368_s21 }
  0x2c   : > { %239 = vperm.xlu0 %433, %v236_v1   ;;  %v182_v3 = vcombine.high %v180_v2, %v180_v2  ;;  %v185_v4 = vsel %vm184_vm0, %v180_v2, 0.0  ;;  %v242_v43 = vunpack.c.l.s4 %v551_v42  ;;  %v245_v48 = vshrl.u32 %v244_v44, 7  ;;  %s268_s29 = sshll.u32 %s177_s28, 4  ;;  %s252_s5 = scalar_lea.sflag [#allocation4], %s654_s18  ;;  %s269_s29 = int_to_ptr.vmem [resolvable:$true] %s268_s29 }
  0x2d   : > { %v186_v6 = vrot.slane %v185_v4, 4  ;;  %s467_s6 = scalar_lea.vmem %s269_s29, 128  ;;  %s552_s7 = smov [#allocation5]  }
  0x2e   : > { %v192_v5 = vsel %vm184_vm0, %v182_v3, 0.0  ;;  %v243_v47 = vunpack.c.0.s8 %v242_v43  ;;  %p468_p8 = scmp.ne.s32.totalorder %s269_s29, %s467_s6  ;;  %s471_s8 = sshll.u32 %s552_s7, 4  ;;  %s472_s8 = int_to_ptr.vmem [resolvable:$false] %s471_s8 }
  0x2f   : > { %v193_v7 = vrot.slane %v192_v5, 4  ;;  %v187_v8 = vadd.f32 %v186_v6, %v185_v4  ;;  %s473_s12 = scalar_lea.vmem %s472_s8, 256  ;;  %p474_p0 = scmp.lt.s32.totalorder %s269_s29, %s472_s8 }
  0x30   : > { %v246_v50 = vsub.s32 %v243_v47, %v245_v48  ;;  %p469_p11 = pnand %p468_p8, %p619_p9  ;;  %p475_p1 = scmp.lt.s32.totalorder %s473_s12, %s467_s6 }
  0x31   : > { %v194_v9 = vadd.f32 %v193_v7, %v192_v5  ;;  %v188_v10 = vrot.slane %v187_v8, 2 }
  0x32   : > { %p470_p12 = pneg %p469_p11  ;;  %p476_p2 = por %p475_p1, %p474_p0 }
  0x33   : > { %v195_v11 = vrot.slane %v194_v9, 2  ;;  %v189_v12 = vadd.f32 %v188_v10, %v187_v8 }
  0x34   : > { %p477_p3 = pnand %p476_p2, %p470_p12 }
  0x35   : > { %v196_v13 = vadd.f32 %v195_v11, %v194_v9  ;;  %v190_v14 = vrot.slane %v189_v12, 1 }
  0x37   : > { %v197_v15 = vrot.slane %v196_v13, 1  ;;  %v191_v16 = vadd.f32 %v190_v14, %v189_v12 }
  0x39   : > { %v198_v17 = vadd.f32 %v197_v15, %v196_v13  ;;  %v200_v18 = vmul.f32 0.25, %v191_v16 }
  0x3b   : > { %v201_v19 = vmul.f32 0.25, %v198_v17 }
  0x3d   : > { %v204_v20 = vcombine.low %v200_v18, %v201_v19 }
  0x3f   : > { %v206_v21 = vsub.f32 %v180_v2, %v204_v20 }
  0x41   : > { %v207_v22 = vmul.f32 %v206_v21, %v206_v21 }
  0x43   : > { %v209_v23 = vcombine.high %v207_v22, %v207_v22  ;;  %v211_v24 = vsel %vm184_vm0, %v207_v22, 0.0 }
  0x44   : > { %v212_v26 = vrot.slane %v211_v24, 4 }
  0x45   : > { %v218_v25 = vsel %vm184_vm0, %v209_v23, 0.0 }
  0x46   : > { %v219_v27 = vrot.slane %v218_v25, 4  ;;  %v213_v28 = vadd.f32 %v212_v26, %v211_v24 }
  0x48   : > { %v220_v29 = vadd.f32 %v219_v27, %v218_v25  ;;  %v214_v30 = vrot.slane %v213_v28, 2 }
  0x4a   : > { %v221_v31 = vrot.slane %v220_v29, 2  ;;  %v215_v32 = vadd.f32 %v214_v30, %v213_v28 }
  0x4c   : > { %v222_v33 = vadd.f32 %v221_v31, %v220_v29  ;;  %v216_v34 = vrot.slane %v215_v32, 1 }
  0x4e   : > { %v223_v35 = vrot.slane %v222_v33, 1  ;;  %v217_v36 = vadd.f32 %v216_v34, %v215_v32 }
  0x50   : > { %v224_v37 = vadd.f32 %v223_v35, %v222_v33  ;;  %v225_v38 = vmul.f32 0.25, %v217_v36 }
  0x52   : > { %v226_v39 = vmul.f32 0.25, %v224_v37  ;;  %v227_v40 = vadd.f32 1e-05, %v225_v38 }
  0x54   : > { %v228_v41 = vadd.f32 1e-05, %v226_v39  ;;  %435 = vrsqrt.f32 %v227_v40 }
  0x56   : > { %437 = vrsqrt.f32 %v228_v41 }
  0x61   : > { %v436_v45 = vpop.eup %435 }
  0x63   : > { %v438_v46 = vpop.eup %437 }
  0x64   : > { %v233_v49 = vcombine.low %v436_v45, %v438_v46 }
  0x66   : > { %v235_v51 = vmul.f32 %v233_v49, %v206_v21 }
  0xa7   : > { %v240_v52 = vpop.permute.xlu0 %239 }
  0xa8   : > { %v247_v53 = vrot.slane %v240_v52, %v246_v50 }
  0xaa   : > { %v249_v54 = vmul.f32 %v247_v53, %v235_v51 }
  0xac   : > { %250 = vst [vmem:[%s177_s28] sm:$0xff] %v249_v54 }
  0xad   : > { %480 = shalt.err (!%p477_p3)
}
  0xae   : > { %s481_s15 = scalar_lea.hbm %s266_s4, 128  ;;  %s485_s19 = scalar_lea.hbm %s715_s2, 256 }
  0xaf   : > { %p482_p5 = scmp.ne.s32.totalorder %s266_s4, %s481_s15  ;;  %p486_p10 = scmp.lt.s32.totalorder %s266_s4, %s715_s2 }
  0xb0   : > { %p487_p4 = scmp.lt.s32.totalorder %s485_s19, %s481_s15 }
  0xb1   : > { %p483_p6 = pnand %p482_p5, %p619_p9 }
  0xb2   : > { %p488_p13 = por %p487_p4, %p486_p10 }
  0xb3   : > { %p484_p7 = pneg %p483_p6 }
  0xb5   : > { %p489_p8 = pnand %p488_p13, %p484_p7 }
  0xb7   : > { %492 = shalt.err (!%p489_p8)
}
  0xb8   : > { %371 = dma.vmem_to_hbm [thread:$0]  (%p619_p9), %s269_s29, 128, %s266_s4, %s252_s5  }
  0xb9 PF: > { %s280_s26 = sand.u32 1, %s527_s9   ;;  %p721_p11 = scmp.ne.s32.totalorder %s719_s24, 0 }
  0xba   : > { %p722_p12 = scmp.ge.s32.totalorder %s547_s14, 2  ;;  %s281_s27 = scalar_lea.sflag [#allocation4], %s280_s26 }
  0xbc   : > { %p378_p0 = pnand %p722_p12, %p721_p11 }
  0xbe   : > { %p379_p1 = pneg %p378_p0 }
  0xc0   : > { %522 = dma.done.wait (%p379_p1), %s281_s27, 128  }
  0xc1   : > { %524 = vsyncadd (%p379_p1), %s281_s27, 4294967168  ;;  %s18_s14 = sadd.s32 1, %s547_s14   ;;  %s723_s9 = smov %s531_s10 }
  0xc2   : > { %p15_p2 = scmp.ge.s32.totalorder %s18_s14, 4   ;;  %s724_s10 = smov %s535_s11 }
  0xc3   : > { %s725_s11 = smov %s624_s23  ;;  %s726_s12 = smov %s543_s13 }
  0xc4   : > { %s727_s13 = smov %s729_s17  ;;  %17 = sbr.rel (!%p15_p2) target bundleno = 6 (0x6), region = 73 }
  0xc9   :  { %286 = vsyncpa [#allocation3], 1 }
  0xca   :  { %288 = vsyncpa [#allocation3 + $0x1], 1 }
  0xcb   :  { %289 = vsyncpa [#allocation4], 1 }
  0xcc   :  { %291 = vsyncpa [#allocation4 + $0x1], 1 }

</bundles_post_ra>
